<compile_context>
chip_gen: v7x
topology: tpu7x:2x2x1
jax: 0.10.0
libtpu: 0.0.40
codegen_flags: <defaults>
</compile_context>

<pallas_src>
import jax
import jax.numpy as jnp
from jax.experimental import pallas as pl
from jax.experimental.pallas import tpu as pltpu


def model_kernel(packed_ref, c5_ref, out_ref):
    packed = packed_ref[...]                                  # (5, 10), one vreg

    x = packed[:, 0:2]                                        # x1
    u1 = packed[:, 2:4]                                       # dropout-1 uniforms
    u2 = packed[:, 4:6]                                       # dropout-2 uniforms
    c3 = packed[:, 6:10]                                      # (5, 4) parameter

    # Inverted dropout (training=True semantics): keep if u >= p, scale 1/(1-p).
    # TODO(synk): matches torch dropout semantics but not torch's RNG stream.
    c1 = jnp.where(u1 >= 0.3, x * (1.0 / 0.7), 0.0)           # p = 0.3
    c2 = jnp.where(u2 >= 0.5, x * 2.0, 0.0)                   # p = 0.5

    # c4 lives entirely in lanes 0..7 of one vreg; the concat is a few
    # XLU/VPU ops that do not touch VMEM.
    c4 = jnp.concatenate([c1, c2, c3], axis=-1)               # (5, 8)

    # c6 = F.linear(c5, c4) = c5 @ c4.T  — a single MXU round trip.
    dn = (((1,), (1,)), ((), ()))                              # contract last dims
    out_ref[...] = jax.lax.dot_general(
        c5_ref[...], c4, dn,
        preferred_element_type=jnp.float32,
        precision=jax.lax.Precision.HIGHEST,
    )                                                          # (4, 5)


def model_forward(x1, u, c3, c5):
    # Pack the three row-aligned (5, *) arrays into one slab -> single DMA.
    packed = jnp.concatenate([x1, u, c3], axis=-1)             # (5, 10)

    out_shape = jax.ShapeDtypeStruct((c5.shape[0], x1.shape[0]), jnp.float32)

    vmem = pl.BlockSpec(memory_space=pltpu.MemorySpace.VMEM)
    return pl.pallas_call(
        model_kernel,
        out_shape=out_shape,
        in_specs=[vmem, vmem],      # full arrays, single block, no grid
        out_specs=vmem,
    )(packed, c5)


if __name__ == "__main__":
    key = jax.random.PRNGKey(0)
    k_x, k_u, k_c3, k_c5 = jax.random.split(key, 4)

    # x1 ~ randn; adapted to (5, 2) so the concat with the (5, 4) parameter is
    # well-formed (the original (1, 2) + dim=2 cat cannot run in torch either).
    x1 = jax.random.normal(k_x, (5, 2), dtype=jnp.float32)

    # One uniform draw feeds both dropout masks (cols 0:2 -> p=0.3, 2:4 -> p=0.5).
    u = jax.random.uniform(k_u, (5, 4), dtype=jnp.float32)

    c3 = jax.random.uniform(k_c3, (5, 4), dtype=jnp.float32)   # nn.Parameter(rand(5,4))
    c5 = jax.random.uniform(k_c5, (4, 8), dtype=jnp.float32)   # rand, in_features fixed to 8

    out = model_forward(x1, u, c3, c5)
    jax.block_until_ready(out)

    # Pure-JAX reference check (same math, no pallas) for safety.
    u1, u2 = u[:, 0:2], u[:, 2:4]
    c1 = jnp.where(u1 >= 0.3, x1 / 0.7, 0.0)
    c2 = jnp.where(u2 >= 0.5, x1 * 2.0, 0.0)
    ref = c5 @ jnp.concatenate([c1, c2, c3], axis=-1).T
    assert out.shape == (4, 5) and out.dtype == jnp.float32
    assert jnp.allclose(out, ref, atol=1e-5, rtol=1e-5)

    print("KERNEL_OK")
</pallas_src>

<mosaic_0001>
module attributes {stable_mosaic.version = 11 : i64} {
  func.func @model_kernel(%arg0: memref<5x10xf32, #tpu.memory_space<vmem>>, %arg1: memref<4x8xf32, #tpu.memory_space<vmem>>, %arg2: memref<4x5xf32, #tpu.memory_space<vmem>>) attributes {dimension_semantics = [], scalar_prefetch = 0 : i64, scratch_operands = 0 : i64, tpu.core_type = #tpu.core_type<tc>} {
    %c0 = arith.constant 0 : index
    %c0_0 = arith.constant 0 : index
    %0 = vector.load %arg0[%c0, %c0_0] : memref<5x10xf32, #tpu.memory_space<vmem>>, vector<5x10xf32>
    %1 = vector.extract_strided_slice %0 {offsets = [0, 0], sizes = [5, 2], strides = [1, 1]} : vector<5x10xf32> to vector<5x2xf32>
    %2 = vector.extract_strided_slice %0 {offsets = [0, 2], sizes = [5, 2], strides = [1, 1]} : vector<5x10xf32> to vector<5x2xf32>
    %3 = vector.extract_strided_slice %0 {offsets = [0, 4], sizes = [5, 2], strides = [1, 1]} : vector<5x10xf32> to vector<5x2xf32>
    %4 = vector.extract_strided_slice %0 {offsets = [0, 6], sizes = [5, 4], strides = [1, 1]} : vector<5x10xf32> to vector<5x4xf32>
    %cst = arith.constant 3.000000e-01 : f32
    %5 = vector.broadcast %cst : f32 to vector<5x2xf32>
    %6 = arith.cmpf oge, %2, %5 : vector<5x2xf32>
    %cst_1 = arith.constant 1.42857146 : f32
    %7 = vector.broadcast %cst_1 : f32 to vector<5x2xf32>
    %8 = arith.mulf %1, %7 : vector<5x2xf32>
    %cst_2 = arith.constant 0.000000e+00 : f32
    %9 = vector.broadcast %cst_2 : f32 to vector<5x2xf32>
    %10 = arith.select %6, %8, %9 : vector<5x2xi1>, vector<5x2xf32>
    %cst_3 = arith.constant 5.000000e-01 : f32
    %11 = vector.broadcast %cst_3 : f32 to vector<5x2xf32>
    %12 = arith.cmpf oge, %3, %11 : vector<5x2xf32>
    %cst_4 = arith.constant 2.000000e+00 : f32
    %13 = vector.broadcast %cst_4 : f32 to vector<5x2xf32>
    %14 = arith.mulf %1, %13 : vector<5x2xf32>
    %cst_5 = arith.constant 0.000000e+00 : f32
    %15 = vector.broadcast %cst_5 : f32 to vector<5x2xf32>
    %16 = arith.select %12, %14, %15 : vector<5x2xi1>, vector<5x2xf32>
    %17 = tpu.concatenate %10, %16, %4 in 1 : vector<5x2xf32>, vector<5x2xf32>, vector<5x4xf32> -> vector<5x8xf32>
    %c0_6 = arith.constant 0 : index
    %c0_7 = arith.constant 0 : index
    %18 = vector.load %arg1[%c0_6, %c0_7] : memref<4x8xf32, #tpu.memory_space<vmem>>, vector<4x8xf32>
    %cst_8 = arith.constant dense<0.000000e+00> : vector<4x5xf32>
    %19 = tpu.matmul %18, %17, %cst_8 {dimension_numbers = #tpu.dot_dimension_numbers<[1], [1], [0], [0], [0, 0, 1, 0], [], []>, precision = #tpu.contract_precision<fp32>} : vector<4x8xf32>, vector<5x8xf32>, vector<4x5xf32> -> vector<4x5xf32>
    %c0_9 = arith.constant 0 : index
    %c0_10 = arith.constant 0 : index
    %20 = vector.load %arg2[%c0_9, %c0_10] : memref<4x5xf32, #tpu.memory_space<vmem>>, vector<4x5xf32>
    tpu.vector_store %arg2[%c0_9, %c0_10], %19 {strides = array<i32>} : memref<4x5xf32, #tpu.memory_space<vmem>>, vector<4x5xf32>,
    return
  }
}

</mosaic_0001>

<bundles_post_ra>
// kernel: tpu_custom_call.1
= control target key start
LH: loop header
LB: loop body
LE: loop exit
PB: predicated region body
PF: predicated region fallthrough
CT: control target
= control target key end

     0   :  { %7 = vsyncpa [#allocation3], 0  ;;  %s735_s0 = inlined_call_operand.hbm [shape: f32[5,10], index: 0, kind: input, shape index: {}]   ;;  %s736_s1 = inlined_call_operand.hbm [shape: f32[4,8], index: 1, kind: input, shape index: {}]   ;;  %s737_s2 = inlined_call_operand.hbm [shape: f32[4,5], index: 2, kind: output, shape index: {}]  }
   0x1   :  { %8 = vsyncpa [#allocation6], 0 }
   0x2   :  { %9 = vsyncpa [#allocation4], 0  ;;  %s670_s9 = smov [#allocation2]   ;;  %s671_s11 = smov [#allocation5]  }
   0x3   :  { %s16_s10 = sshll.u32 %s670_s9, 4  ;;  %s26_s12 = sshll.u32 %s671_s11, 4  ;;  %s17_s10 = int_to_ptr.vmem [resolvable:$true] %s16_s10  ;;  %s27_s12 = int_to_ptr.vmem [resolvable:$true] %s26_s12 }
   0x4   :  { %s598_s15 = scalar_lea.hbm %s735_s0, 128 }
   0x5   :  { %p599_p0 = scmp.ne.s32.totalorder %s735_s0, %s598_s15  ;;  %p602_p1 = scmp.lt.u32.totalorder %s598_s15, %s735_s0 }
   0x7   :  { %p604_p2 = pnand %p602_p1, %p599_p0 }
   0x9   :  { %607 = shalt.err (!%p604_p2)
}
   0xa   :  { %s608_s20 = scalar_lea.vmem %s17_s10, 128  ;;  %p613_p4 = scmp.lt.s32.totalorder %s17_s10, %s17_s10 }
   0xb   :  { %p609_p3 = scmp.ne.s32.totalorder %s17_s10, %s608_s20  ;;  %p614_p5 = scmp.lt.s32.totalorder %s608_s20, %s608_s20 }
   0xd   :  { %p615_p6 = por %p614_p5, %p613_p4 }
   0xf   :  { %p616_p7 = pnand %p615_p6, %p609_p3 }
  0x11   :  { %619 = shalt.err (!%p616_p7)
}
  0x12   :  { %19 = dma.hbm_to_vmem [thread:$0]  %s735_s0, 128, %s17_s10, [#allocation3]  }
  0x13   :  { %s620_s25 = scalar_lea.hbm %s736_s1, 64 }
  0x14   :  { %p621_p8 = scmp.ne.s32.totalorder %s736_s1, %s620_s25  ;;  %p624_p9 = scmp.lt.u32.totalorder %s620_s25, %s736_s1 }
  0x16   :  { %p626_p10 = pnand %p624_p9, %p621_p8 }
  0x18   :  { %629 = shalt.err (!%p626_p10)
}
  0x19   :  { %s630_s30 = scalar_lea.vmem %s27_s12, 64  ;;  %p635_p12 = scmp.lt.s32.totalorder %s27_s12, %s27_s12 }
  0x1a   :  { %p631_p11 = scmp.ne.s32.totalorder %s27_s12, %s630_s30  ;;  %p636_p13 = scmp.lt.s32.totalorder %s630_s30, %s630_s30 }
  0x1c   :  { %p637_p0 = por %p636_p13, %p635_p12 }
  0x1e   :  { %p638_p1 = pnand %p637_p0, %p631_p11 }
  0x20   :  { %641 = shalt.err (!%p638_p1)
}
  0x21   :  { %29 = dma.hbm_to_vmem [thread:$0]  %s736_s1, 64, %s27_s12, [#allocation6]  }
  0x22   :  { %664 = dma.done.wait [#allocation3], 128  }
  0x23   :  { %665 = vsyncadd [#allocation3], 4294967168 }
  0x24   :  { %666 = dma.done.wait [#allocation6], 64  }
  0x25   :  { %667 = vsyncadd [#allocation6], 4294967232  ;;  %v36_v0 = vld [vmem:[#allocation2] sm:$0x1f]  ;;  %s672_s4 = smov 2   ;;  %s673_s5 = smov 4  }
  0x26   :  { %v38_v1 = vmul.f32 1.4285715, %v36_v0  ;;  %v45_v2 = vmul.f32 2.0, %v36_v0  ;;  %s674_s6 = smov 126   ;;  %v675_v3 = vmov 0.0   ;;  %vm676_vm1 = vmmov 0  }
  0x27   :  { %551 = vmatprep.subr.mxu1 %v675_v3  ;;  %566 = vmatprep.subr.mxu0 %v675_v3  ;;  %vm37_vm0 = vcmp.ge.f32.partialorder %v36_v0, 0.3  ;;  %vm44_vm2 = vcmp.ge.f32.partialorder %v36_v0, 0.5  ;;  %v67_v8 = vld [vmem:[#allocation5] sm:$0xf]  ;;  %vm68_vm3 = vcmask 64512  }
  0x28   :  { %40 = vrot.lane.b32.xlu0 %v38_v1, %s672_s4  ;;  %553 = vmatprep.mubr.msk.f32.mxu1 %vm676_vm1, %v675_v3  ;;  %v70_v9 = vsel %vm68_vm3, %v67_v8, 0  ;;  %vm63_vm4 = vcmask 15360   ;;  %vm65_vm5 = vcmask 31744   ;;  %s677_s1 = smov [#allocation7]   ;;  %vm521_vm6 = vcmask 35840  }
  0x29   :  { %568 = vmatprep.mubr.msk.f32.mxu0 %vm676_vm1, %v675_v3  ;;  %v141_v10 = vand.u32 4294901760, %v70_v9  ;;  %s529_s7 = sshll.u32 %s677_s1, 4  ;;  %s530_s7 = int_to_ptr.vmem [resolvable:$true] %s529_s7 }
  0x2a   :  { %s642_s8 = scalar_lea.vmem %s530_s7, 64  ;;  %p647_p3 = scmp.lt.s32.totalorder %s530_s7, %s530_s7 }
  0x2b   :  { %v142_v11 = vsub.f32 %v70_v9, %v141_v10  ;;  %p643_p2 = scmp.ne.s32.totalorder %s530_s7, %s642_s8  ;;  %p648_p4 = scmp.lt.s32.totalorder %s642_s8, %s642_s8 }
  0x2c   :  { %47 = vrot.lane.b32.xlu0 %v45_v2, %s673_s5 }
  0x2d   :  { %v143_v13 = vand.u32 4294901760, %v142_v11  ;;  %p649_p5 = por %p648_p4, %p647_p3 }
  0x2f   :  { %v144_v17 = vsub.f32 %v142_v11, %v143_v13  ;;  %p650_p6 = pnand %p649_p5, %p643_p2 }
  0x30   :  { %60 = vrot.lane.b32.xlu0 %v36_v0, %s674_s6 }
  0x31   :  { %v145_v21 = vand.u32 4294901760, %v144_v17 }
  0x9a   :  { %v41_v4 = vpop.permute.xlu0 %40 }
  0x9b   :  { %v43_v5 = vsel %vm37_vm0, %v41_v4, 0.0 }
  0x9c   :  { %52 = vrot.lane.b32.xlu1 %v43_v5, %s674_s6 }
  0x9e   :  { %v48_v6 = vpop.permute.xlu0 %47 }
  0x9f   :  { %v50_v7 = vsel %vm44_vm2, %v48_v6, 0.0 }
  0xa0   :  { %56 = vrot.lane.b32.xlu1 %v50_v7, %s674_s6 }
  0xa2   :  { %v61_v14 = vpop.permute.xlu0 %60 }
 0x10e   :  { %v53_v12 = vpop.permute.xlu1 %52 }
 0x112   :  { %v57_v15 = vpop.permute.xlu1 %56 }
 0x113   :  { %v64_v16 = vsel %vm63_vm4, %v53_v12, %v57_v15 }
 0x114   :  { %v66_v18 = vsel %vm65_vm5, %v64_v16, %v61_v14 }
 0x115   :  { %v73_v19 = vsel %vm68_vm3, %v66_v18, 0 }
 0x116   :  { %v76_v20 = vand.u32 4294901760, %v73_v19 }
 0x118   :  { %v153_v22 = vsub.f32 %v73_v19, %v76_v20  ;;  %552 = vmatpush3.xpose.msra.mxu1 %v76_v20  ;;  %567 = vmatpush3.xpose.msra.mxu0 %v76_v20 }
 0x119   :  { %571 = vmatprep.subr.mxu0 %v675_v3  ;;  %556 = vmatprep.subr.mxu1 %v675_v3 }
 0x11a   :  { %v154_v23 = vand.u32 4294901760, %v153_v22 }
 0x11b   :  { %554 = vmatmul.mubr.f32.vlgmr.msra.gmra.mrb[0].mxu1 %v145_v21  ;;  %569 = vmatmul.mubr.f32.vlgmr.msra.gmra.mrb[0].mxu0 %v143_v13 }
 0x11c   :  { %572 = vmatpush3.xpose.msra.mxu0 %v154_v23  ;;  %v155_v24 = vsub.f32 %v153_v22, %v154_v23  ;;  %558 = vmatprep.mubr.msk.f32.mxu1 %vm676_vm1, %v675_v3 }
 0x11d   :  { %573 = vmatprep.mubr.msk.f32.mxu0 %vm676_vm1, %v675_v3  ;;  %576 = vmatprep.subr.mxu0 %v675_v3 }
 0x11e   :  { %v156_v25 = vand.u32 4294901760, %v155_v24 }
 0x120   :  { %557 = vmatpush3.xpose.msra.mxu1 %v156_v25 }
 0x121   :  { %561 = vmatprep.subr.mxu1 %v675_v3 }
 0x123   :  { %559 = vmatmul.mubr.f32.vlgmr.msra.gmra.mrb[0].mxu1 %v141_v10  ;;  %574 = vmatmul.mubr.f32.vlgmr.msra.gmra.mrb[0].mxu0 %v141_v10 }
 0x124   :  { %577 = vmatpush3.xpose.msra.mxu0 %v76_v20  ;;  %562 = vmatpush3.xpose.msra.mxu1 %v153_v22 }
 0x125   :  { %563 = vmatprep.mubr.msk.f32.mxu1 %vm676_vm1, %v675_v3  ;;  %578 = vmatprep.mubr.msk.f32.mxu0 %vm676_vm1, %v675_v3 }
 0x12b   :  { %564 = vmatmul.mubr.f32.vlgmr.msra.gmra.mrb[0].mxu1 %v142_v11  ;;  %579 = vmatmul.mubr.f32.vlgmr.msra.gmra.mrb[0].mxu0 %v141_v10 }
 0x1fe   :  { %v297_v26 = vpop.f32.mrb[0].mxu1  ;;  %v517_v27 = vpop.f32.mrb[0].mxu0 }
 0x1ff   :  { %v581_v28 = vadd.f32 %v517_v27, %v297_v26  ;;  %v565_v29 = vpop.f32.mrb[1].mxu1  ;;  %v580_v30 = vpop.f32.mrb[1].mxu0 }
 0x201   :  { %522 = vst.msk [vmem:[#allocation7] sm:$0xf] %vm521_vm6, %v581_v28 }
 0x202   :  { %653 = shalt.err (!%p650_p6)
}
 0x203   :  { %s654_s11 = scalar_lea.hbm %s737_s2, 64 }
 0x204   :  { %p655_p7 = scmp.ne.s32.totalorder %s737_s2, %s654_s11  ;;  %p658_p8 = scmp.lt.u32.totalorder %s654_s11, %s737_s2 }
 0x206   :  { %p660_p9 = pnand %p658_p8, %p655_p7 }
 0x208   :  { %663 = shalt.err (!%p660_p9)
}
 0x209   :  { %532 = dma.vmem_to_hbm [thread:$0]  %s530_s7, 64, %s737_s2, [#allocation4]  }
 0x20a   :  { %668 = dma.done.wait [#allocation4], 64  }
 0x20b   :  { %669 = vsyncadd [#allocation4], 4294967232 }
 0x20c   :  { %536 = vsyncpa [#allocation3], 1 }
 0x20d   :  { %537 = vsyncpa [#allocation6], 1 }
 0x20e   :  { %538 = vsyncpa [#allocation4], 1 }

</bundles_post_ra>
